<compile_context>
chip_gen: v5e
topology: v5e:2x2
jax: 0.10.0
libtpu: 0.0.40
codegen_flags: <defaults>
</compile_context>

<pallas_src>
import functools
import math

import jax
import jax.numpy as jnp
from jax.experimental import pallas as pl
from jax.experimental.pallas import tpu as pltpu

# ---------------- configuration ------------------------------------------------
B = 2        # batch of mentions
C = 4        # candidate entities per mention
L = 8        # sequence length (power of two -> in-kernel pos derivation is free)
H = 32       # encoder hidden size  -> box dim d = H // 2 = 16
FF = 64      # feed-forward width
V = 64       # vocab size
EMB_ROWS = 128   # [tok_emb (V) ; pos_emb (L) ; zero pad ; bias row] -> K = 128 for
                 # the fused one-hot embedding/QKV matmul (fills v5e MXU depth)

VOL_TEMP = 1.0       # volume_temperature
VOL_INT_TEMP = 1.0   # intersection_temperature used inside Volume
INT_TEMP = 1.0       # gumbel beta for Intersection

EULER_GAMMA = 0.57721566490153286060
EPS = 1e-23          # eps used by box_embeddings log_bessel_volume_approx (f32 only!)


# ---------------- in-kernel math helpers (VPU/EUP, kept in f32) -----------------
def _softplus(x, beta, threshold=20.0):
    # matches torch.nn.functional.softplus(x, beta, threshold)
    bx = beta * x
    return jnp.where(bx > threshold, x,
                     jnp.log1p(jnp.exp(jnp.minimum(bx, threshold))) / beta)


def _logaddexp(a, b):
    m = jnp.maximum(a, b)
    return m + jnp.log1p(jnp.exp(-jnp.abs(a - b)))


# ---------------- fused kernel: embed -> encoder -> CLS boxes -> loss ------------
def _fused_kernel(ids_ref, seqk_ref, wfirst_ref, woo1_ref, w2_ref,
                  logits_ref, loss_ref, *,
                  seq_len, batch, n_cand, vocab,
                  vol_temp, vol_int_temp, int_temp):
    bf16 = jnp.bfloat16
    ff, h = w2_ref.shape
    emb_rows = wfirst_ref.shape[0]
    n_seq = batch * (1 + n_cand)
    nl = n_seq * seq_len
    d = h // 2

    # ---- one-hot selectors built fully in-register (no pos / seq_q inputs) ----
    tok = ids_ref[0:nl, :]                    # (nl, 1) flattened token ids
    cls_tok = ids_ref[nl:nl + n_seq, :]       # (n_seq, 1) CLS token id per sequence

    cols = jax.lax.broadcasted_iota(jnp.int32, (nl, emb_rows), 1)
    rows = jax.lax.broadcasted_iota(jnp.int32, (nl, 1), 0)
    if seq_len & (seq_len - 1) == 0:
        pos_in_seq = rows & (seq_len - 1)
    else:
        pos_in_seq = rows % seq_len
    pos_col = vocab + pos_in_seq
    # TODO(synk): assumes token ids < vocab; an id in [vocab, vocab+L) would alias
    # a position column (no runtime check under jit).
    hot_full = jnp.logical_or(cols == tok, cols == pos_col)
    onehot_full = jnp.where(hot_full, 1.0, 0.0).astype(bf16)          # (nl, 128)

    cols_c = jax.lax.broadcasted_iota(jnp.int32, (n_seq, emb_rows), 1)
    hot_cls = (cols_c == cls_tok) | (cols_c == vocab) | (cols_c == emb_rows - 1)
    onehot_cls = jnp.where(hot_cls, 1.0, 0.0).astype(bf16)            # (n_seq, 128)

    # ---- fused first stage: two independent lane-dense K=128 MXU passes ----
    # W_first = [ emb(+b2) | emb@(wq/sqrt(h)) | emb@w1(+b1) | emb@wk | emb@wv ]
    kv = jnp.dot(onehot_full, wfirst_ref[:, 2 * h + ff:],
                 preferred_element_type=jnp.float32)                  # (nl, 2h)
    k = kv[:, :h]
    v = kv[:, h:]

    cls_mix = jnp.dot(onehot_cls, wfirst_ref[:, :2 * h + ff],
                      preferred_element_type=jnp.float32)             # (n_seq, 2h+ff)
    x_cls = cls_mix[:, :h]             # token+pos embedding at CLS (+ b2 folded in)
    q_cls = cls_mix[:, h:2 * h]        # query, 1/sqrt(h) already folded into wq
    xw1 = cls_mix[:, 2 * h:]           # x_cls @ w1 + b1 (bias row folded in)

    # ---- CLS-query attention over its own sequence's (unpadded) keys ----
    scores = jax.lax.dot_general(
        q_cls.astype(bf16), k.astype(bf16),
        dimension_numbers=(((1,), (1,)), ((), ())),                   # q @ k^T
        preferred_element_type=jnp.float32)                           # (n_seq, nl)
    # seq_k is -1 on padded keys, so one int compare folds the same-sequence
    # constraint and the key-padding mask.  Query i's sequence id is simply i.
    q_seq = jax.lax.broadcasted_iota(jnp.int32, (n_seq, 1), 0)
    allowed = seqk_ref[...] == q_seq                                  # (n_seq, nl)
    scores = jnp.where(allowed, scores, -1e9)
    scores = scores - jnp.max(scores, axis=-1, keepdims=True)         # f32 softmax
    p = jnp.exp(scores)
    p = p * pl.reciprocal(jnp.sum(p, axis=-1, keepdims=True), approx=True)

    ctx = jnp.dot(p.astype(bf16), v.astype(bf16),
                  preferred_element_type=jnp.float32)                 # (n_seq, h)
    # W_oo1 = [wo | wo@w1]: attention output and its first-FF contribution.
    ao = jnp.dot(ctx.astype(bf16), woo1_ref[...],
                 preferred_element_type=jnp.float32)                  # (n_seq, h+ff)
    attn = ao[:, :h]
    ff_pre = xw1 + ao[:, h:]            # = (x_cls + attn) @ w1 + b1
    ff_act = jnp.maximum(ff_pre, 0.0)
    ff_out = jnp.dot(ff_act.astype(bf16), w2_ref[...],
                     preferred_element_type=jnp.float32)              # (n_seq, h)
    y = x_cls + attn + ff_out           # CLS hidden states, (n_seq, h); b2 in x_cls

    # ---- MinDeltaBoxTensor.from_vector (f32) ----
    m = y[:batch, :]                                                  # (B, h)
    e = y[batch:, :].reshape(batch, n_cand, h)                        # (B, C, h)
    mz = m[:, :d][:, None, :]                                         # (B, 1, d)
    mZ = mz + _softplus(m[:, d:][:, None, :], 1.0, 20.0)
    ez = e[..., :d]                                                   # (B, C, d)
    eZ = ez + _softplus(e[..., d:], 1.0, 20.0)

    # ---- gumbel intersection ----
    t = int_temp
    iz = t * _logaddexp(mz / t, ez / t)
    iz = jnp.maximum(iz, jnp.maximum(mz, ez))
    iZ = -t * _logaddexp(-mZ / t, -eZ / t)
    iZ = jnp.minimum(iZ, jnp.minimum(mZ, eZ))

    # ---- log Bessel-approx soft volume (f32; EPS underflows in bf16) ----
    def log_vol(z, zz):
        side = zz - z - 2.0 * EULER_GAMMA * vol_int_temp
        return jnp.sum(jnp.log(_softplus(side, 1.0 / vol_temp, 20.0) + EPS), axis=-1)

    inter_vol = log_vol(iz, iZ)                                       # (B, C)
    mention_vol = log_vol(mz, mZ)                                     # (B, 1)
    logits = inter_vol - mention_vol                                  # (B, C)
    logits_ref[...] = logits

    # CrossEntropyLoss(logits, labels=0) == mean_b [ logsumexp(logits_b) - logits_b[0] ]
    mx = jnp.max(logits, axis=-1, keepdims=True)
    lse = mx + jnp.log(jnp.sum(jnp.exp(logits - mx), axis=-1, keepdims=True))
    per_ex = lse - logits[:, 0:1]
    loss_ref[...] = jnp.sum(per_ex, keepdims=True) * (1.0 / float(batch))


# ---------------- parameter init (all pre-fusion in f32, one bf16 cast) ---------
def init_params(key):
    ks = jax.random.split(key, 8)
    s = 0.02
    tok_emb = s * jax.random.normal(ks[0], (V, H), jnp.float32)
    pos_emb = s * jax.random.normal(ks[1], (L, H), jnp.float32)
    wq = s * jax.random.normal(ks[2], (H, H), jnp.float32)
    wk = s * jax.random.normal(ks[3], (H, H), jnp.float32)
    wv = s * jax.random.normal(ks[4], (H, H), jnp.float32)
    wo = s * jax.random.normal(ks[5], (H, H), jnp.float32)
    w1 = s * jax.random.normal(ks[6], (H, FF), jnp.float32)
    w2 = s * jax.random.normal(ks[7], (FF, H), jnp.float32)
    b1 = jnp.zeros((FF,), jnp.float32)
    b2 = jnp.zeros((H,), jnp.float32)

    # combined [tok_emb ; pos_emb ; zero pad ; bias row] table, K padded to 128
    emb = jnp.zeros((EMB_ROWS, H), jnp.float32)
    emb = emb.at[:V].set(tok_emb).at[V:V + L].set(pos_emb)

    scale = 1.0 / math.sqrt(float(H))
    # Fused first-stage slab.  Row 127 (the "bias row", hot only in the CLS
    # one-hot) carries b2 in the x-block and b1 in the w1-block, so both encoder
    # biases come out of the same matmul for free.
    x_block = emb.at[EMB_ROWS - 1].set(b2)
    q_block = emb @ (wq * scale)                 # attention 1/sqrt(H) folded in
    w1_block = (emb @ w1).at[EMB_ROWS - 1].set(b1)
    k_block = emb @ wk
    v_block = emb @ wv
    w_first = jnp.concatenate([x_block, q_block, w1_block, k_block, v_block], axis=1)

    w_oo1 = jnp.concatenate([wo, wo @ w1], axis=1)   # [wo | wo@w1], (H, H+FF)

    return {
        "w_first": w_first.astype(jnp.bfloat16),     # (128, 2H+FF+2H) = (128, 192)
        "w_oo1": w_oo1.astype(jnp.bfloat16),         # (32, 96)
        "w2": w2.astype(jnp.bfloat16),               # (64, 32)
    }


# ---------------- DualEncoder.forward (single fused pallas_call) ---------------
@jax.jit
def dual_encoder_forward(mention_token_ids, mention_masks,
                         candidate_token_ids, candidate_masks, params):
    # .long() casts -> int32
    mention_token_ids = mention_token_ids.astype(jnp.int32)
    mention_masks = mention_masks.astype(jnp.int32)
    candidate_token_ids = candidate_token_ids.astype(jnp.int32)
    candidate_masks = candidate_masks.astype(jnp.int32)

    b, l = mention_token_ids.shape
    _, c, _ = candidate_token_ids.shape
    n = b + b * c              # mention + entity encoders share weights -> batch them
    nl = n * l

    # host-side glue: concat sequences; pack token ids + CLS ids into ONE column
    all_ids = jnp.concatenate(
        [mention_token_ids, candidate_token_ids.reshape(b * c, l)], axis=0)     # (n, l)
    all_masks = jnp.concatenate(
        [mention_masks, candidate_masks.reshape(b * c, l)], axis=0)             # (n, l)

    ids_packed = jnp.concatenate(
        [all_ids.reshape(nl, 1), all_ids[:, 0:1]], axis=0)                      # (nl+n, 1)
    row = jnp.arange(nl, dtype=jnp.int32)
    seq_k = jnp.where(all_masks.reshape(nl) > 0, row // l, -1).reshape(1, nl)

    kernel = functools.partial(
        _fused_kernel, seq_len=l, batch=b, n_cand=c, vocab=V,
        vol_temp=VOL_TEMP, vol_int_temp=VOL_INT_TEMP, int_temp=INT_TEMP)

    # grid=() : whole problem (<1 MiB) in one VMEM-resident invocation.
    # TODO(synk): if B*C or L grows, add a ("parallel",) grid over sequences so
    # v7x's second TensorCore is used and attention stays per-sequence blocked.
    logits, loss = pl.pallas_call(
        kernel,
        out_shape=(jax.ShapeDtypeStruct((b, c), jnp.float32),
                   jax.ShapeDtypeStruct((1, 1), jnp.float32)),
        in_specs=[pl.BlockSpec(memory_space=pltpu.MemorySpace.VMEM)] * 5,
        out_specs=(pl.BlockSpec(memory_space=pltpu.MemorySpace.VMEM),
                   pl.BlockSpec(memory_space=pltpu.MemorySpace.VMEM)),
    )(ids_packed, seq_k, params["w_first"], params["w_oo1"], params["w2"])
    return loss[0, 0], logits


# ---------------- main ----------------------------------------------------------
if __name__ == "__main__":
    key = jax.random.PRNGKey(0)
    k_params, k_mid, k_cid, k_len = jax.random.split(key, 4)

    params = init_params(k_params)

    mention_token_ids = jax.random.randint(k_mid, (B, L), 0, V, dtype=jnp.int32)
    mention_masks = jnp.ones((B, L), jnp.int32)

    candidate_token_ids = jax.random.randint(k_cid, (B, C, L), 0, V, dtype=jnp.int32)
    cand_lens = jax.random.randint(k_len, (B, C), 4, L + 1, dtype=jnp.int32)
    candidate_masks = (jnp.arange(L)[None, None, :] < cand_lens[..., None]).astype(jnp.int32)

    loss, logits = dual_encoder_forward(mention_token_ids, mention_masks,
                                        candidate_token_ids, candidate_masks, params)
    jax.block_until_ready((loss, logits))
    assert logits.shape == (B, C)
    assert bool(jnp.isfinite(loss))
    print("KERNEL_OK")
</pallas_src>

<mosaic_0001>
module attributes {stable_mosaic.version = 11 : i64} {
  func.func @_fused_kernel(%arg0: memref<90x1xi32, #tpu.memory_space<vmem>>, %arg1: memref<1x80xi32, #tpu.memory_space<vmem>>, %arg2: memref<128x192xbf16, #tpu.memory_space<vmem>>, %arg3: memref<32x96xbf16, #tpu.memory_space<vmem>>, %arg4: memref<64x32xbf16, #tpu.memory_space<vmem>>, %arg5: memref<2x4xf32, #tpu.memory_space<vmem>>, %arg6: memref<1x1xf32, #tpu.memory_space<vmem>>) attributes {dimension_semantics = [], scalar_prefetch = 0 : i64, scratch_operands = 0 : i64, tpu.core_type = #tpu.core_type<tc>} {
    %c0 = arith.constant 0 : index
    %c0_0 = arith.constant 0 : index
    %0 = vector.load %arg0[%c0, %c0_0] : memref<90x1xi32, #tpu.memory_space<vmem>>, vector<80x1xi32>
    %c80 = arith.constant 80 : index
    %c0_1 = arith.constant 0 : index
    %1 = vector.load %arg0[%c80, %c0_1] : memref<90x1xi32, #tpu.memory_space<vmem>>, vector<10x1xi32>
    %2 = tpu.iota {dimensions = array<i32: 1>} : vector<80x128xi32>
    %3 = tpu.iota {dimensions = array<i32: 0>} : vector<80x1xi32>
    %c7_i32 = arith.constant 7 : i32
    %4 = vector.broadcast %c7_i32 : i32 to vector<80x1xi32>
    %5 = arith.andi %3, %4 : vector<80x1xi32>
    %c64_i32 = arith.constant 64 : i32
    %6 = vector.broadcast %c64_i32 : i32 to vector<80x1xi32>
    %7 = arith.addi %6, %5 : vector<80x1xi32>
    %8 = vector.broadcast %0 : vector<80x1xi32> to vector<80x128xi32>
    %9 = arith.cmpi eq, %2, %8 : vector<80x128xi32>
    %10 = vector.broadcast %7 : vector<80x1xi32> to vector<80x128xi32>
    %11 = arith.cmpi eq, %2, %10 : vector<80x128xi32>
    %12 = arith.ori %9, %11 : vector<80x128xi1>
    %cst = arith.constant 1.000000e+00 : f32
    %cst_2 = arith.constant 0.000000e+00 : f32
    %13 = vector.broadcast %cst : f32 to vector<80x128xf32>
    %14 = vector.broadcast %cst_2 : f32 to vector<80x128xf32>
    %15 = arith.select %12, %13, %14 : vector<80x128xi1>, vector<80x128xf32>
    %16 = arith.truncf %15 : vector<80x128xf32> to vector<80x128xbf16>
    %17 = tpu.iota {dimensions = array<i32: 1>} : vector<10x128xi32>
    %18 = vector.broadcast %1 : vector<10x1xi32> to vector<10x128xi32>
    %19 = arith.cmpi eq, %17, %18 : vector<10x128xi32>
    %c64_i32_3 = arith.constant 64 : i32
    %20 = vector.broadcast %c64_i32_3 : i32 to vector<10x128xi32>
    %21 = arith.cmpi eq, %17, %20 : vector<10x128xi32>
    %22 = arith.ori %19, %21 : vector<10x128xi1>
    %c127_i32 = arith.constant 127 : i32
    %23 = vector.broadcast %c127_i32 : i32 to vector<10x128xi32>
    %24 = arith.cmpi eq, %17, %23 : vector<10x128xi32>
    %25 = arith.ori %22, %24 : vector<10x128xi1>
    %cst_4 = arith.constant 1.000000e+00 : f32
    %cst_5 = arith.constant 0.000000e+00 : f32
    %26 = vector.broadcast %cst_4 : f32 to vector<10x128xf32>
    %27 = vector.broadcast %cst_5 : f32 to vector<10x128xf32>
    %28 = arith.select %25, %26, %27 : vector<10x128xi1>, vector<10x128xf32>
    %29 = arith.truncf %28 : vector<10x128xf32> to vector<10x128xbf16>
    %c0_6 = arith.constant 0 : index
    %c128 = arith.constant 128 : index
    %30 = vector.load %arg2[%c0_6, %c128] : memref<128x192xbf16, #tpu.memory_space<vmem>>, vector<128x64xbf16>
    %cst_7 = arith.constant dense<0.000000e+00> : vector<80x64xf32>
    %31 = tpu.matmul %16, %30, %cst_7 {dimension_numbers = #tpu.dot_dimension_numbers<[1], [0], [0], [1], [0, 0, 1, 1], [], []>} : vector<80x128xbf16>, vector<128x64xbf16>, vector<80x64xf32> -> vector<80x64xf32>
    %32 = vector.extract_strided_slice %31 {offsets = [0, 0], sizes = [80, 32], strides = [1, 1]} : vector<80x64xf32> to vector<80x32xf32>
    %33 = vector.extract_strided_slice %31 {offsets = [0, 32], sizes = [80, 32], strides = [1, 1]} : vector<80x64xf32> to vector<80x32xf32>
    %c0_8 = arith.constant 0 : index
    %c0_9 = arith.constant 0 : index
    %34 = vector.load %arg2[%c0_8, %c0_9] : memref<128x192xbf16, #tpu.memory_space<vmem>>, vector<128x128xbf16>
    %cst_10 = arith.constant dense<0.000000e+00> : vector<10x128xf32>
    %35 = tpu.matmul %29, %34, %cst_10 {dimension_numbers = #tpu.dot_dimension_numbers<[1], [0], [0], [1], [0, 0, 1, 1], [], []>} : vector<10x128xbf16>, vector<128x128xbf16>, vector<10x128xf32> -> vector<10x128xf32>
    %36 = vector.extract_strided_slice %35 {offsets = [0, 0], sizes = [10, 32], strides = [1, 1]} : vector<10x128xf32> to vector<10x32xf32>
    %37 = vector.extract_strided_slice %35 {offsets = [0, 32], sizes = [10, 32], strides = [1, 1]} : vector<10x128xf32> to vector<10x32xf32>
    %38 = vector.extract_strided_slice %35 {offsets = [0, 64], sizes = [10, 64], strides = [1, 1]} : vector<10x128xf32> to vector<10x64xf32>
    %39 = arith.truncf %37 : vector<10x32xf32> to vector<10x32xbf16>
    %40 = arith.truncf %32 : vector<80x32xf32> to vector<80x32xbf16>
    %cst_11 = arith.constant dense<0.000000e+00> : vector<10x80xf32>
    %41 = tpu.matmul %39, %40, %cst_11 {dimension_numbers = #tpu.dot_dimension_numbers<[1], [1], [0], [0], [0, 0, 1, 0], [], []>} : vector<10x32xbf16>, vector<80x32xbf16>, vector<10x80xf32> -> vector<10x80xf32>
    %42 = tpu.iota {dimensions = array<i32: 0>} : vector<10x1xi32>
    %c0_12 = arith.constant 0 : index
    %c0_13 = arith.constant 0 : index
    %43 = vector.load %arg1[%c0_12, %c0_13] : memref<1x80xi32, #tpu.memory_space<vmem>>, vector<1x80xi32>
    %44 = vector.broadcast %43 : vector<1x80xi32> to vector<10x80xi32>
    %45 = vector.broadcast %42 : vector<10x1xi32> to vector<10x80xi32>
    %46 = arith.cmpi eq, %44, %45 : vector<10x80xi32>
    %cst_14 = arith.constant -1.000000e+09 : f32
    %47 = vector.broadcast %cst_14 : f32 to vector<10x80xf32>
    %48 = arith.select %46, %41, %47 : vector<10x80xi1>, vector<10x80xf32>
    %cst_15 = arith.constant dense<0xFF800000> : vector<10xf32>
    %49 = vector.multi_reduction <maximumf>, %48, %cst_15 [1] : vector<10x80xf32> to vector<10xf32>
    %50 = vector.shape_cast %49 : vector<10xf32> to vector<10x1xf32>
    %51 = vector.broadcast %50 : vector<10x1xf32> to vector<10x80xf32>
    %52 = arith.subf %48, %51 : vector<10x80xf32>
    %53 = math.exp %52 : vector<10x80xf32>
    %cst_16 = arith.constant dense<0.000000e+00> : vector<10xf32>
    %54 = vector.multi_reduction <add>, %53, %cst_16 [1] : vector<10x80xf32> to vector<10xf32>
    %55 = vector.shape_cast %54 : vector<10xf32> to vector<10x1xf32>
    %56 = tpu.reciprocal %55 {approx = true} : vector<10x1xf32> -> vector<10x1xf32>
    %57 = vector.broadcast %56 : vector<10x1xf32> to vector<10x80xf32>
    %58 = arith.mulf %53, %57 : vector<10x80xf32>
    %59 = arith.truncf %58 : vector<10x80xf32> to vector<10x80xbf16>
    %60 = arith.truncf %33 : vector<80x32xf32> to vector<80x32xbf16>
    %cst_17 = arith.constant dense<0.000000e+00> : vector<10x32xf32>
    %61 = tpu.matmul %59, %60, %cst_17 {dimension_numbers = #tpu.dot_dimension_numbers<[1], [0], [0], [1], [0, 0, 1, 1], [], []>} : vector<10x80xbf16>, vector<80x32xbf16>, vector<10x32xf32> -> vector<10x32xf32>
    %62 = arith.truncf %61 : vector<10x32xf32> to vector<10x32xbf16>
    %c0_18 = arith.constant 0 : index
    %c0_19 = arith.constant 0 : index
    %63 = vector.load %arg3[%c0_18, %c0_19] : memref<32x96xbf16, #tpu.memory_space<vmem>>, vector<32x96xbf16>
    %cst_20 = arith.constant dense<0.000000e+00> : vector<10x96xf32>
    %64 = tpu.matmul %62, %63, %cst_20 {dimension_numbers = #tpu.dot_dimension_numbers<[1], [0], [0], [1], [0, 0, 1, 1], [], []>} : vector<10x32xbf16>, vector<32x96xbf16>, vector<10x96xf32> -> vector<10x96xf32>
    %65 = vector.extract_strided_slice %64 {offsets = [0, 0], sizes = [10, 32], strides = [1, 1]} : vector<10x96xf32> to vector<10x32xf32>
    %66 = vector.extract_strided_slice %64 {offsets = [0, 32], sizes = [10, 64], strides = [1, 1]} : vector<10x96xf32> to vector<10x64xf32>
    %67 = arith.addf %38, %66 : vector<10x64xf32>
    %cst_21 = arith.constant 0.000000e+00 : f32
    %68 = vector.broadcast %cst_21 : f32 to vector<10x64xf32>
    %69 = arith.maximumf %67, %68 : vector<10x64xf32>
    %70 = arith.truncf %69 : vector<10x64xf32> to vector<10x64xbf16>
    %c0_22 = arith.constant 0 : index
    %c0_23 = arith.constant 0 : index
    %71 = vector.load %arg4[%c0_22, %c0_23] : memref<64x32xbf16, #tpu.memory_space<vmem>>, vector<64x32xbf16>
    %cst_24 = arith.constant dense<0.000000e+00> : vector<10x32xf32>
    %72 = tpu.matmul %70, %71, %cst_24 {dimension_numbers = #tpu.dot_dimension_numbers<[1], [0], [0], [1], [0, 0, 1, 1], [], []>} : vector<10x64xbf16>, vector<64x32xbf16>, vector<10x32xf32> -> vector<10x32xf32>
    %73 = arith.addf %36, %65 : vector<10x32xf32>
    %74 = arith.addf %73, %72 : vector<10x32xf32>
    %75 = vector.extract_strided_slice %74 {offsets = [0, 0], sizes = [2, 32], strides = [1, 1]} : vector<10x32xf32> to vector<2x32xf32>
    %76 = vector.extract_strided_slice %74 {offsets = [2, 0], sizes = [8, 32], strides = [1, 1]} : vector<10x32xf32> to vector<8x32xf32>
    %77 = vector.shape_cast %76 : vector<8x32xf32> to vector<2x4x32xf32>
    %78 = vector.extract_strided_slice %75 {offsets = [0, 0], sizes = [2, 16], strides = [1, 1]} : vector<2x32xf32> to vector<2x16xf32>
    %79 = vector.shape_cast %78 : vector<2x16xf32> to vector<2x1x16xf32>
    %80 = vector.extract_strided_slice %75 {offsets = [0, 16], sizes = [2, 16], strides = [1, 1]} : vector<2x32xf32> to vector<2x16xf32>
    %81 = vector.shape_cast %80 : vector<2x16xf32> to vector<2x1x16xf32>
    %cst_25 = arith.constant 1.000000e+00 : f32
    %82 = vector.broadcast %cst_25 : f32 to vector<2x1x16xf32>
    %83 = arith.mulf %82, %81 : vector<2x1x16xf32>
    %cst_26 = arith.constant 2.000000e+01 : f32
    %84 = vector.broadcast %cst_26 : f32 to vector<2x1x16xf32>
    %85 = arith.cmpf ogt, %83, %84 : vector<2x1x16xf32>
    %cst_27 = arith.constant 2.000000e+01 : f32
    %86 = vector.broadcast %cst_27 : f32 to vector<2x1x16xf32>
    %87 = arith.minimumf %83, %86 : vector<2x1x16xf32>
    %88 = math.exp %87 : vector<2x1x16xf32>
    %89 = math.log1p %88 : vector<2x1x16xf32>
    %cst_28 = arith.constant 1.000000e+00 : f32
    %90 = vector.broadcast %cst_28 : f32 to vector<2x1x16xf32>
    %91 = arith.divf %89, %90 : vector<2x1x16xf32>
    %92 = arith.select %85, %81, %91 : vector<2x1x16xi1>, vector<2x1x16xf32>
    %93 = arith.addf %79, %92 : vector<2x1x16xf32>
    %94 = vector.extract_strided_slice %77 {offsets = [0, 0, 0], sizes = [2, 4, 16], strides = [1, 1, 1]} : vector<2x4x32xf32> to vector<2x4x16xf32>
    %95 = vector.extract_strided_slice %77 {offsets = [0, 0, 16], sizes = [2, 4, 16], strides = [1, 1, 1]} : vector<2x4x32xf32> to vector<2x4x16xf32>
    %cst_29 = arith.constant 1.000000e+00 : f32
    %96 = vector.broadcast %cst_29 : f32 to vector<2x4x16xf32>
    %97 = arith.mulf %96, %95 : vector<2x4x16xf32>
    %cst_30 = arith.constant 2.000000e+01 : f32
    %98 = vector.broadcast %cst_30 : f32 to vector<2x4x16xf32>
    %99 = arith.cmpf ogt, %97, %98 : vector<2x4x16xf32>
    %cst_31 = arith.constant 2.000000e+01 : f32
    %100 = vector.broadcast %cst_31 : f32 to vector<2x4x16xf32>
    %101 = arith.minimumf %97, %100 : vector<2x4x16xf32>
    %102 = math.exp %101 : vector<2x4x16xf32>
    %103 = math.log1p %102 : vector<2x4x16xf32>
    %cst_32 = arith.constant 1.000000e+00 : f32
    %104 = vector.broadcast %cst_32 : f32 to vector<2x4x16xf32>
    %105 = arith.divf %103, %104 : vector<2x4x16xf32>
    %106 = arith.select %99, %95, %105 : vector<2x4x16xi1>, vector<2x4x16xf32>
    %107 = arith.addf %94, %106 : vector<2x4x16xf32>
    %cst_33 = arith.constant 1.000000e+00 : f32
    %108 = vector.broadcast %cst_33 : f32 to vector<2x1x16xf32>
    %109 = arith.divf %79, %108 : vector<2x1x16xf32>
    %cst_34 = arith.constant 1.000000e+00 : f32
    %110 = vector.broadcast %cst_34 : f32 to vector<2x4x16xf32>
    %111 = arith.divf %94, %110 : vector<2x4x16xf32>
    %112 = vector.broadcast %109 : vector<2x1x16xf32> to vector<2x4x16xf32>
    %113 = arith.maximumf %112, %111 : vector<2x4x16xf32>
    %114 = vector.broadcast %109 : vector<2x1x16xf32> to vector<2x4x16xf32>
    %115 = arith.subf %114, %111 : vector<2x4x16xf32>
    %116 = math.absf %115 : vector<2x4x16xf32>
    %cst_35 = arith.constant 0.000000e+00 : f32
    %117 = vector.broadcast %cst_35 : f32 to vector<2x4x16xf32>
    %118 = arith.subf %117, %116 : vector<2x4x16xf32>
    %119 = math.exp %118 : vector<2x4x16xf32>
    %120 = math.log1p %119 : vector<2x4x16xf32>
    %121 = arith.addf %113, %120 : vector<2x4x16xf32>
    %cst_36 = arith.constant 1.000000e+00 : f32
    %122 = vector.broadcast %cst_36 : f32 to vector<2x4x16xf32>
    %123 = arith.mulf %122, %121 : vector<2x4x16xf32>
    %124 = vector.broadcast %79 : vector<2x1x16xf32> to vector<2x4x16xf32>
    %125 = arith.maximumf %124, %94 : vector<2x4x16xf32>
    %126 = arith.maximumf %123, %125 : vector<2x4x16xf32>
    %cst_37 = arith.constant 0.000000e+00 : f32
    %127 = vector.broadcast %cst_37 : f32 to vector<2x1x16xf32>
    %128 = arith.subf %127, %93 : vector<2x1x16xf32>
    %cst_38 = arith.constant 1.000000e+00 : f32
    %129 = vector.broadcast %cst_38 : f32 to vector<2x1x16xf32>
    %130 = arith.divf %128, %129 : vector<2x1x16xf32>
    %cst_39 = arith.constant 0.000000e+00 : f32
    %131 = vector.broadcast %cst_39 : f32 to vector<2x4x16xf32>
    %132 = arith.subf %131, %107 : vector<2x4x16xf32>
    %cst_40 = arith.constant 1.000000e+00 : f32
    %133 = vector.broadcast %cst_40 : f32 to vector<2x4x16xf32>
    %134 = arith.divf %132, %133 : vector<2x4x16xf32>
    %135 = vector.broadcast %130 : vector<2x1x16xf32> to vector<2x4x16xf32>
    %136 = arith.maximumf %135, %134 : vector<2x4x16xf32>
    %137 = vector.broadcast %130 : vector<2x1x16xf32> to vector<2x4x16xf32>
    %138 = arith.subf %137, %134 : vector<2x4x16xf32>
    %139 = math.absf %138 : vector<2x4x16xf32>
    %cst_41 = arith.constant 0.000000e+00 : f32
    %140 = vector.broadcast %cst_41 : f32 to vector<2x4x16xf32>
    %141 = arith.subf %140, %139 : vector<2x4x16xf32>
    %142 = math.exp %141 : vector<2x4x16xf32>
    %143 = math.log1p %142 : vector<2x4x16xf32>
    %144 = arith.addf %136, %143 : vector<2x4x16xf32>
    %cst_42 = arith.constant -1.000000e+00 : f32
    %145 = vector.broadcast %cst_42 : f32 to vector<2x4x16xf32>
    %146 = arith.mulf %145, %144 : vector<2x4x16xf32>
    %147 = vector.broadcast %93 : vector<2x1x16xf32> to vector<2x4x16xf32>
    %148 = arith.minimumf %147, %107 : vector<2x4x16xf32>
    %149 = arith.minimumf %146, %148 : vector<2x4x16xf32>
    %150 = arith.subf %149, %126 : vector<2x4x16xf32>
    %cst_43 = arith.constant 1.15443134 : f32
    %151 = vector.broadcast %cst_43 : f32 to vector<2x4x16xf32>
    %152 = arith.subf %150, %151 : vector<2x4x16xf32>
    %cst_44 = arith.constant 1.000000e+00 : f32
    %153 = vector.broadcast %cst_44 : f32 to vector<2x4x16xf32>
    %154 = arith.mulf %153, %152 : vector<2x4x16xf32>
    %cst_45 = arith.constant 2.000000e+01 : f32
    %155 = vector.broadcast %cst_45 : f32 to vector<2x4x16xf32>
    %156 = arith.cmpf ogt, %154, %155 : vector<2x4x16xf32>
    %cst_46 = arith.constant 2.000000e+01 : f32
    %157 = vector.broadcast %cst_46 : f32 to vector<2x4x16xf32>
    %158 = arith.minimumf %154, %157 : vector<2x4x16xf32>
    %159 = math.exp %158 : vector<2x4x16xf32>
    %160 = math.log1p %159 : vector<2x4x16xf32>
    %cst_47 = arith.constant 1.000000e+00 : f32
    %161 = vector.broadcast %cst_47 : f32 to vector<2x4x16xf32>
    %162 = arith.divf %160, %161 : vector<2x4x16xf32>
    %163 = arith.select %156, %152, %162 : vector<2x4x16xi1>, vector<2x4x16xf32>
    %cst_48 = arith.constant 9.99999999E-24 : f32
    %164 = vector.broadcast %cst_48 : f32 to vector<2x4x16xf32>
    %165 = arith.addf %163, %164 : vector<2x4x16xf32>
    %166 = math.log %165 : vector<2x4x16xf32>
    %cst_49 = arith.constant dense<0.000000e+00> : vector<2x4xf32>
    %167 = vector.multi_reduction <add>, %166, %cst_49 [2] : vector<2x4x16xf32> to vector<2x4xf32>
    %168 = arith.subf %93, %79 : vector<2x1x16xf32>
    %cst_50 = arith.constant 1.15443134 : f32
    %169 = vector.broadcast %cst_50 : f32 to vector<2x1x16xf32>
    %170 = arith.subf %168, %169 : vector<2x1x16xf32>
    %cst_51 = arith.constant 1.000000e+00 : f32
    %171 = vector.broadcast %cst_51 : f32 to vector<2x1x16xf32>
    %172 = arith.mulf %171, %170 : vector<2x1x16xf32>
    %cst_52 = arith.constant 2.000000e+01 : f32
    %173 = vector.broadcast %cst_52 : f32 to vector<2x1x16xf32>
    %174 = arith.cmpf ogt, %172, %173 : vector<2x1x16xf32>
    %cst_53 = arith.constant 2.000000e+01 : f32
    %175 = vector.broadcast %cst_53 : f32 to vector<2x1x16xf32>
    %176 = arith.minimumf %172, %175 : vector<2x1x16xf32>
    %177 = math.exp %176 : vector<2x1x16xf32>
    %178 = math.log1p %177 : vector<2x1x16xf32>
    %cst_54 = arith.constant 1.000000e+00 : f32
    %179 = vector.broadcast %cst_54 : f32 to vector<2x1x16xf32>
    %180 = arith.divf %178, %179 : vector<2x1x16xf32>
    %181 = arith.select %174, %170, %180 : vector<2x1x16xi1>, vector<2x1x16xf32>
    %cst_55 = arith.constant 9.99999999E-24 : f32
    %182 = vector.broadcast %cst_55 : f32 to vector<2x1x16xf32>
    %183 = arith.addf %181, %182 : vector<2x1x16xf32>
    %184 = math.log %183 : vector<2x1x16xf32>
    %cst_56 = arith.constant dense<0.000000e+00> : vector<2x1xf32>
    %185 = vector.multi_reduction <add>, %184, %cst_56 [2] : vector<2x1x16xf32> to vector<2x1xf32>
    %186 = vector.broadcast %185 : vector<2x1xf32> to vector<2x4xf32>
    %187 = arith.subf %167, %186 : vector<2x4xf32>
    %c0_57 = arith.constant 0 : index
    %c0_58 = arith.constant 0 : index
    %188 = vector.load %arg5[%c0_57, %c0_58] : memref<2x4xf32, #tpu.memory_space<vmem>>, vector<2x4xf32>
    tpu.vector_store %arg5[%c0_57, %c0_58], %187 {strides = array<i32>} : memref<2x4xf32, #tpu.memory_space<vmem>>, vector<2x4xf32>,
    %cst_59 = arith.constant dense<0xFF800000> : vector<2xf32>
    %189 = vector.multi_reduction <maximumf>, %187, %cst_59 [1] : vector<2x4xf32> to vector<2xf32>
    %190 = vector.shape_cast %189 : vector<2xf32> to vector<2x1xf32>
    %191 = vector.broadcast %190 : vector<2x1xf32> to vector<2x4xf32>
    %192 = arith.subf %187, %191 : vector<2x4xf32>
    %193 = math.exp %192 : vector<2x4xf32>
    %cst_60 = arith.constant dense<0.000000e+00> : vector<2xf32>
    %194 = vector.multi_reduction <add>, %193, %cst_60 [1] : vector<2x4xf32> to vector<2xf32>
    %195 = vector.shape_cast %194 : vector<2xf32> to vector<2x1xf32>
    %196 = math.log %195 : vector<2x1xf32>
    %197 = arith.addf %190, %196 : vector<2x1xf32>
    %198 = vector.extract_strided_slice %187 {offsets = [0, 0], sizes = [2, 1], strides = [1, 1]} : vector<2x4xf32> to vector<2x1xf32>
    %199 = arith.subf %197, %198 : vector<2x1xf32>
    %200 = vector.shape_cast %199 : vector<2x1xf32> to vector<1x2x1xf32>
    %cst_61 = arith.constant dense<0.000000e+00> : vector<1xf32>
    %201 = vector.multi_reduction <add>, %200, %cst_61 [1, 2] : vector<1x2x1xf32> to vector<1xf32>
    %202 = vector.shape_cast %201 : vector<1xf32> to vector<1x1x1xf32>
    %203 = vector.extract %202[0, 0, 0] : f32 from vector<1x1x1xf32>
    %204 = vector.broadcast %203 : f32 to vector<1x1xf32>
    %cst_62 = arith.constant 5.000000e-01 : f32
    %205 = vector.broadcast %cst_62 : f32 to vector<1x1xf32>
    %206 = arith.mulf %204, %205 : vector<1x1xf32>
    %c0_63 = arith.constant 0 : index
    %c0_64 = arith.constant 0 : index
    %207 = vector.load %arg6[%c0_63, %c0_64] : memref<1x1xf32, #tpu.memory_space<vmem>>, vector<1x1xf32>
    tpu.vector_store %arg6[%c0_63, %c0_64], %206 {strides = array<i32>} : memref<1x1xf32, #tpu.memory_space<vmem>>, vector<1x1xf32>,
    return
  }
}

</mosaic_0001>

<bundles_post_ra>
// kernel: dual_encoder_forward.1
= control target key start
LH: loop header
LB: loop body
LE: loop exit
PB: predicated region body
PF: predicated region fallthrough
CT: control target
= control target key end

     0   :  { %12 = vsyncpa [#allocation3], 0  ;;  %v1198_v2 = vmov 0   ;;  %s1613_s0 = inlined_call_operand.vmem [shape: s32[90,1], index: 0, kind: input, shape index: {}]   ;;  %s1614_s1 = inlined_call_operand.vmem [shape: s32[1,80], index: 1, kind: input, shape index: {}]   ;;  %s1615_s2 = inlined_call_operand.vmem [shape: bf16[128,192], index: 2, kind: input, shape index: {}]   ;;  %s1616_s3 = inlined_call_operand.vmem [shape: bf16[32,96], index: 3, kind: input, shape index: {}]   ;;  %s1617_s4 = inlined_call_operand.vmem [shape: bf16[64,32], index: 4, kind: input, shape index: {}]   ;;  %s1618_s5 = inlined_call_operand.hbm [shape: f32[2,4], index: 5, kind: output, shape index: {0}]   ;;  %s1619_s6 = inlined_call_operand.hbm [shape: f32[1,1], index: 6, kind: output, shape index: {1}]  }
   0x1   :  { %v31_v0 = vld [vmem:[%s1613_s0 + $0x30] sm:$0xff]  ;;  %v25_v1 = vld [vmem:[%s1613_s0] sm:$0xff]  ;;  %1073 = vset.pattern.permute.xlu1 %v1198_v2  ;;  %1072 = vset.pattern.permute.xlu0 %v1198_v2  ;;  %v1039_v5 = vld [vmem:[%s1615_s2 + $0x78] sm:$0xf0] }
   0x2   :  { %v33_v3 = vld [vmem:[%s1613_s0 + $0x40] sm:$0xff]  ;;  %89 = vperm.xlu0 %1072, %v31_v0   ;;  %71 = vperm.xlu1 %1073, %v25_v1   ;;  %v953_v4 = vld [vmem:[%s1615_s2 + $0x74] sm:$0xf] }
   0x3   :  { %1074 = vset.pattern.permute.xlu2 %v1198_v2  ;;  %v954_v6 = vor.u32 %v1039_v5, %v953_v4 }
   0x4   :  { %95 = vperm.xlu2 %1074, %v33_v3  }
   0x5   :  { %13 = vsyncpa [#allocation5], 0  ;;  %v32_v7 = vld [vmem:[%s1613_s0 + $0x38] sm:$0xff]  ;;  %v26_v8 = vld [vmem:[%s1613_s0 + $0x8] sm:$0xff]  ;;  %226 = vmatpush.bf16.msra.mxu0 %v954_v6  ;;  %1054 = vmatpush.bf16.msra.mxu3 %v954_v6  ;;  %v37_v52 = vlaneseq  ;;  %s1202_s23 = smov 64   ;;  %s898_s26 = sshll.u32 %s1618_s5, 4  ;;  %s899_s26 = int_to_ptr.hbm [resolvable:$true] %s898_s26 }
   0x6   :  { %v34_v9 = vld [vmem:[%s1613_s0 + $0x48] sm:$0xff]  ;;  %v27_v10 = vld [vmem:[%s1613_s0 + $0x10] sm:$0xff]  ;;  %v28_v11 = vld [vmem:[%s1613_s0 + $0x18] sm:$0xff]  ;;  %s1204_s27 = smov [#allocation2]   ;;  %s1205_s29 = smov [#allocation4]  }
   0x7   :  { %v35_v12 = vld [vmem:[%s1613_s0 + $0x50] sm:$0xff]  ;;  %v36_v13 = vld [vmem:[%s1613_s0 + $0x58] sm:$0x3]  ;;  %v29_v14 = vld [vmem:[%s1613_s0 + $0x20] sm:$0xff]  ;;  %v1367_v59 = vshrl.u32 %v37_v52, 7  ;;  %s896_s28 = sshll.u32 %s1204_s27, 4  ;;  %s897_s28 = int_to_ptr.vmem [resolvable:$true] %s896_s28 }
   0x8   :  { %v30_v15 = vld [vmem:[%s1613_s0 + $0x28] sm:$0xff]  ;;  %v949_v16 = vld [vmem:[%s1615_s2 + $0x64] sm:$0xf]  ;;  %v945_v18 = vld [vmem:[%s1615_s2 + $0x54] sm:$0xf]  ;;  %s907_s30 = sshll.u32 %s1205_s29, 4  ;;  %s908_s30 = int_to_ptr.vmem [resolvable:$true] %s907_s30 }
   0x9   :  { %v1038_v17 = vld [vmem:[%s1615_s2 + $0x68] sm:$0xf0]  ;;  %v1037_v20 = vld [vmem:[%s1615_s2 + $0x58] sm:$0xf0]  ;;  %v941_v22 = vld [vmem:[%s1615_s2 + $0x44] sm:$0xf] }
   0xa   :  { %92 = vperm.xlu0 %1072, %v32_v7   ;;  %74 = vperm.xlu1 %1073, %v26_v8   ;;  %v950_v19 = vor.u32 %v1038_v17, %v949_v16  ;;  %v946_v21 = vor.u32 %v1037_v20, %v945_v18  ;;  %v1036_v23 = vld [vmem:[%s1615_s2 + $0x48] sm:$0xf0]  ;;  %v937_v24 = vld [vmem:[%s1615_s2 + $0x34] sm:$0xf]  ;;  %v1035_v26 = vld [vmem:[%s1615_s2 + $0x38] sm:$0xf0] }
   0xb   :  { %v942_v25 = vor.u32 %v1036_v23, %v941_v22  ;;  %v995_v27 = vld [vmem:[%s1615_s2 + $0x70] sm:$0xf]  ;;  %v1047_v28 = vld [vmem:[%s1615_s2 + $0x74] sm:$0xf0]  ;;  %v938_v30 = vor.u32 %v1035_v26, %v937_v24  ;;  %v933_v31 = vld [vmem:[%s1615_s2 + $0x24] sm:$0xf] }
   0xc   :  { %98 = vperm.xlu2 %1074, %v34_v9   ;;  %227 = vmatpush.bf16.msra.mxu0 %v950_v19  ;;  %v996_v29 = vor.u32 %v1047_v28, %v995_v27  ;;  %v1034_v32 = vld [vmem:[%s1615_s2 + $0x28] sm:$0xf0]  ;;  %v991_v34 = vld [vmem:[%s1615_s2 + $0x60] sm:$0xf]  ;;  %v1046_v35 = vld [vmem:[%s1615_s2 + $0x64] sm:$0xf0] }
   0xd   :  { %1055 = vmatpush.bf16.msra.mxu3 %v950_v19  ;;  %v934_v33 = vor.u32 %v1034_v32, %v933_v31  ;;  %v992_v36 = vor.u32 %v1046_v35, %v991_v34  ;;  %v929_v37 = vld [vmem:[%s1615_s2 + $0x14] sm:$0xf]  ;;  %v1033_v38 = vld [vmem:[%s1615_s2 + $0x18] sm:$0xf0]  ;;  %v987_v40 = vld [vmem:[%s1615_s2 + $0x50] sm:$0xf] }
   0xe   :  { %324 = vmatpush.bf16.msra.mxu1 %v996_v29  ;;  %v930_v39 = vor.u32 %v1033_v38, %v929_v37  ;;  %v1045_v41 = vld [vmem:[%s1615_s2 + $0x54] sm:$0xf0]  ;;  %v925_v43 = vld [vmem:[%s1615_s2 + $0x4] sm:$0xf]  ;;  %v1032_v44 = vld [vmem:[%s1615_s2 + $0x8] sm:$0xf0] }
   0xf   :  { %v988_v42 = vor.u32 %v1045_v41, %v987_v40  ;;  %v926_v45 = vor.u32 %v1032_v44, %v925_v43  ;;  %v983_v46 = vld [vmem:[%s1615_s2 + $0x40] sm:$0xf]  ;;  %v1044_v47 = vld [vmem:[%s1615_s2 + $0x44] sm:$0xf0]  ;;  %v979_v49 = vld [vmem:[%s1615_s2 + $0x30] sm:$0xf] }
  0x10   :  { %228 = vmatpush.bf16.msra.mxu0 %v946_v21  ;;  %v984_v48 = vor.u32 %v1044_v47, %v983_v46  ;;  %v1043_v50 = vld [vmem:[%s1615_s2 + $0x34] sm:$0xf0]  ;;  %v975_v53 = vld [vmem:[%s1615_s2 + $0x20] sm:$0xf]  ;;  %v1042_v54 = vld [vmem:[%s1615_s2 + $0x24] sm:$0xf0] }
  0x11   :  { %1056 = vmatpush.bf16.msra.mxu3 %v946_v21  ;;  %v980_v51 = vor.u32 %v1043_v50, %v979_v49  ;;  %v976_v55 = vor.u32 %v1042_v54, %v975_v53  ;;  %v971_v56 = vld [vmem:[%s1615_s2 + $0x10] sm:$0xf]  ;;  %v1041_v57 = vld [vmem:[%s1615_s2 + $0x14] sm:$0xf0]  ;;  %v46_v60 = vadd.s32 48, %v1367_v59  ;;  %v47_v0 = vadd.s32 56, %v1367_v59 }
  0x12   :  { %77 = vperm.xlu0 %1072, %v27_v10   ;;  %80 = vperm.xlu1 %1073, %v28_v11   ;;  %v972_v58 = vor.u32 %v1041_v57, %v971_v56  ;;  %v967_v61 = vld [vmem:[%s1615_s2] sm:$0xf]  ;;  %v1040_v62 = vld [vmem:[%s1615_s2 + $0x4] sm:$0xf0]  ;;  %v1378_v2 = vadd.s32 8, %v1367_v59  ;;  %v50_v4 = vand.u32 7, %v1367_v59 }
  0x13   :  { %325 = vmatpush.bf16.msra.mxu1 %v992_v36  ;;  %v968_v63 = vor.u32 %v1040_v62, %v967_v61  ;;  %v56_v3 = vand.u32 7, %v46_v60  ;;  %v57_v5 = vand.u32 7, %v47_v0  ;;  %v1382_v9 = vand.u32 127, %v37_v52  ;;  %s1200_s2 = smov 96   ;;  %s909_s0 = sshll.u32 %s1619_s6, 4  ;;  %s910_s0 = int_to_ptr.hbm [resolvable:$true] %s909_s0 }
  0x14   :  { %146 = vperm.xlu2 %1074, %v35_v12   ;;  %229 = vmatpush.bf16.msra.mxu0 %v942_v25  ;;  %v51_v8 = vand.u32 7, %v1378_v2  ;;  %v60_v11 = vadd.s32 64, %v50_v4  ;;  %v48_v12 = vadd.s32 64, %v1367_v59  ;;  %v42_v22 = vadd.s32 16, %v1367_v59 }
  0x15   :  { %1057 = vmatpush.bf16.msra.mxu3 %v942_v25  ;;  %v66_v10 = vadd.s32 64, %v56_v3  ;;  %v43_v23 = vadd.s32 24, %v1367_v59  ;;  %v1199_v26 = vmov 1.0|1.0   ;;  %v44_v37 = vadd.s32 32, %v1367_v59 }
  0x16   :  { %vm110_vm2 = vcmp.eq.s32.totalorder %v1382_v9, %v60_v11  ;;  %v58_v17 = vand.u32 7, %v48_v12  ;;  %v52_v27 = vand.u32 7, %v42_v22  ;;  %v45_v38 = vadd.s32 40, %v1367_v59 }
  0x17   :  { %326 = vmatpush.bf16.msra.mxu1 %v988_v42  ;;  %vm116_vm0 = vcmp.eq.s32.totalorder %v1382_v9, %v66_v10  ;;  %v53_v28 = vand.u32 7, %v43_v23  ;;  %v1075_v10 = vld [vmem:[%s1614_s1] ss:$0 sm:$0xff] }
  0x18   :  { %230 = vmatpush.bf16.msra.mxu0 %v938_v30  ;;  %v68_v24 = vadd.s32 64, %v58_v17  ;;  %v62_v31 = vadd.s32 64, %v52_v27  ;;  %v55_v40 = vand.u32 7, %v45_v38  ;;  %v1048_v27 = vld [vmem:[%s1616_s3] sm:$0xff] }
  0x19   :  { %1058 = vmatpush.bf16.msra.mxu3 %v938_v30 }
  0x1a   :  { %149 = vperm.xlu0 %1072, %v36_v13   ;;  %83 = vperm.xlu1 %1073, %v29_v14   ;;  %v67_v13 = vadd.s32 64, %v57_v5  ;;  %v49_v14 = vadd.s32 72, %v1367_v59  ;;  %vm118_vm14 = vcmp.eq.s32.totalorder %v1382_v9, %v68_v24  ;;  %v65_v43 = vadd.s32 64, %v55_v40 }
  0x1b   :  { %327 = vmatpush.bf16.msra.mxu1 %v984_v48 }
  0x1c   :  { %86 = vperm.xlu2 %1074, %v30_v15   ;;  %231 = vmatpush.bf16.msra.mxu0 %v934_v33  ;;  %v61_v15 = vadd.s32 64, %v51_v8  ;;  %vm117_vm4 = vcmp.eq.s32.totalorder %v1382_v9, %v67_v13  ;;  %v59_v18 = vand.u32 7, %v49_v14 }
  0x1d   :  { %1059 = vmatpush.bf16.msra.mxu3 %v934_v33  ;;  %v63_v33 = vadd.s32 64, %v53_v28 }
  0x1e   :  { %vm111_vm6 = vcmp.eq.s32.totalorder %v1382_v9, %v61_v15  ;;  %v69_v25 = vadd.s32 64, %v59_v18 }
  0x1f   :  { %328 = vmatpush.bf16.msra.mxu1 %v980_v51 }
  0x20   :  { %232 = vmatpush.bf16.msra.mxu0 %v930_v39 }
  0x21   :  { %1060 = vmatpush.bf16.msra.mxu3 %v930_v39  ;;  %v54_v39 = vand.u32 7, %v44_v37 }
  0x23   :  { %329 = vmatpush.bf16.msra.mxu1 %v976_v55  ;;  %v64_v41 = vadd.s32 64, %v54_v39 }
  0x24   :  { %233 = vmatpush.bf16.msra.mxu0 %v926_v45 }
  0x25   :  { %1061 = vmatpush.bf16.msra.mxu3 %v926_v45 }
  0x27   :  { %330 = vmatpush.bf16.msra.mxu1 %v972_v58 }
  0x2b   :  { %331 = vmatpush.bf16.msra.mxu1 %v968_v63 }
  0x5e   :  { %v96_v1 = vpop.permute.xlu2 %95 }
  0x5f   :  { %vm108_vm15 = vcmp.eq.s32.totalorder %v1382_v9, %v96_v1 }
  0x66   :  { %v99_v16 = vpop.permute.xlu2 %98 }
  0x6e   :  { %v147_v29 = vpop.permute.xlu2 %146 }
  0x74   :  { %v90_v6 = vpop.permute.xlu0 %89  ;;  %v72_v7 = vpop.permute.xlu1 %71 }
  0x75   :  { %vm106_vm1 = vcmp.eq.s32.totalorder %v1382_v9, %v90_v6  ;;  %vm100_vm3 = vcmp.eq.s32.totalorder %v1382_v9, %v72_v7 }
  0x76   :  { %vm1391_vm5 = vmor %vm106_vm1, %vm116_vm0  ;;  %vm119_vm0 = vcmp.eq.s32.totalorder %v1382_v9, %v69_v25  ;;  %vm109_vm1 = vcmp.eq.s32.totalorder %v1382_v9, %v99_v16  ;;  %v87_v44 = vpop.permute.xlu2 %86 }
  0x77   :  { %vm120_vm7 = vmor %vm100_vm3, %vm110_vm2  ;;  %vm153_vm2 = vcmp.eq.s32.totalorder %v1382_v9, 64  ;;  %vm151_vm3 = vcmp.eq.s32.totalorder %v1382_v9, %v147_v29 }
  0x7c   :  { %v93_v20 = vpop.permute.xlu0 %92  ;;  %v75_v21 = vpop.permute.xlu1 %74 }
  0x7d   :  { %vm107_vm8 = vcmp.eq.s32.totalorder %v1382_v9, %v93_v20  ;;  %vm101_vm9 = vcmp.eq.s32.totalorder %v1382_v9, %v75_v21 }
  0x7e   :  { %vm127_vm10 = vmor %vm107_vm8, %vm117_vm4  ;;  %vm112_vm8 = vcmp.eq.s32.totalorder %v1382_v9, %v62_v31 }
  0x7f   :  { %vm121_vm11 = vmor %vm101_vm9, %vm111_vm6  ;;  %vm156_vm6 = vcmp.eq.s32.totalorder %v1382_v9, 127 }
  0x80   :  { %vm955_vm12 = vmpackc.low %vm121_vm11, %vm120_vm7 }
  0x81   :  { %956 = vmatmul.msk.bf16.vlgmr.msra.gmra.mxu0 %vm955_vm12, %v1199_v26  ;;  %vm961_vm13 = vmpackc.low %vm127_vm10, %vm1391_vm5  ;;  %vm113_vm10 = vcmp.eq.s32.totalorder %v1382_v9, %v63_v33 }
  0x82   :  { %962 = vmatmul.msk.bf16.vlgmr.msra.gmra.mxu3 %vm961_vm13, %v1199_v26  ;;  %vm1408_vm4 = vmor %vm108_vm15, %vm118_vm14 }
  0x83   :  { %vm1412_vm5 = vmor %vm109_vm1, %vm119_vm0 }
  0x84   :  { %v78_v30 = vpop.permute.xlu0 %77  ;;  %v81_v35 = vpop.permute.xlu1 %80  ;;  %vm154_vm7 = vmor %vm151_vm3, %vm153_vm2 }
  0x85   :  { %vm102_vm9 = vcmp.eq.s32.totalorder %v1382_v9, %v78_v30  ;;  %vm103_vm11 = vcmp.eq.s32.totalorder %v1382_v9, %v81_v35  ;;  %vm963_vm12 = vmpackc.low %vm1412_vm5, %vm1408_vm4 }
  0x86   :  { %vm157_vm13 = vmor %vm154_vm7, %vm156_vm6  ;;  %vm114_vm7 = vcmp.eq.s32.totalorder %v1382_v9, %v64_v41 }
  0x87   :  { %vm122_vm14 = vmor %vm102_vm9, %vm112_vm8  ;;  %vm115_vm8 = vcmp.eq.s32.totalorder %v1382_v9, %v65_v43  ;;  %v1052_v43 = vld [vmem:[%s1617_s4 + $0x10] sm:$0xff] }
  0x88   :  { %vm123_vm15 = vmor %vm103_vm11, %vm113_vm10 }
  0x89   :  { %vm957_vm4 = vmpackc.low %vm123_vm15, %vm122_vm14  ;;  %vm386_vm14 = vcmask 654336   ;;  %vm383_vm15 = vcmp.eq.s32.totalorder %v1075_v10, %v1378_v2 }
  0x8c   :  { %v150_v36 = vpop.permute.xlu0 %149  ;;  %v84_v42 = vpop.permute.xlu1 %83 }
  0x8d   :  { %vm152_vm0 = vcmp.eq.s32.totalorder %v1382_v9, %v150_v36 }
  0x8e   :  { %vm155_vm1 = vmor %vm152_vm0, %vm153_vm2  ;;  %vm104_vm2 = vcmp.eq.s32.totalorder %v1382_v9, %v84_v42  ;;  %vm390_vm0 = vcmask 648192   ;;  %v1053_v42 = vld [vmem:[%s1617_s4 + $0x18] sm:$0xff] }
  0x8f   :  { %vm158_vm3 = vmor %vm155_vm1, %vm156_vm6  ;;  %vm105_vm6 = vcmp.eq.s32.totalorder %v1382_v9, %v87_v44  ;;  %538 = vmatpush.bf16.msrb.mxu1 %v1053_v42  ;;  %v1051_v44 = vld [vmem:[%s1617_s4 + $0x8] sm:$0xff]  ;;  %vm530_vm1 = vcmask 523264  }
  0x90   :  { %vm997_vm5 = vmpackc.low %vm158_vm3, %vm157_vm13  ;;  %vm382_vm13 = vcmp.eq.s32.totalorder %v1075_v10, %v1367_v59  ;;  %vm555_vm3 = vcmask 1041408  }
  0x91   :  { %958 = vmatmul.msk.bf16.gmra.mxu0 %vm957_vm4, %v1199_v26  ;;  %998 = vmatmul.msk.bf16.vlgmr.msra.gmra.mxu1 %vm997_vm5, %v1199_v26  ;;  %vm124_vm9 = vmor %vm104_vm2, %vm114_vm7  ;;  %vm556_vm4 = vcmask 1045508  }
  0x92   :  { %964 = vmatmul.msk.bf16.gmra.mxu3 %vm963_vm12, %v1199_v26  ;;  %vm125_vm10 = vmor %vm105_vm6, %vm115_vm8  ;;  %vm347_vm12 = vcmask 261120  }
  0x93   :  { %vm959_vm11 = vmpackc.low %vm125_vm10, %vm124_vm9  ;;  %539 = vmatpush.bf16.msrb.mxu1 %v1052_v43 }
  0x94   :  { %vm1492_vm5 = vmor %vm555_vm3, %vm556_vm4 }
  0x97   :  { %540 = vmatpush.bf16.msrb.mxu1 %v1051_v44 }
  0xa1   :  { %960 = vmatmul.msk.bf16.gmra.mxu0 %vm959_vm11, %v1199_v26  ;;  %v1049_v26 = vld [vmem:[%s1616_s3 + $0x8] sm:$0xff]  ;;  %s1201_s3 = smov 32  }
  0xa2   :  { %474 = vmatpush.bf16.msrb.mxu3 %v1049_v26 }
  0xa6   :  { %475 = vmatpush.bf16.msrb.mxu3 %v1048_v27 }
  0xfe   :  { %v235_v45 = vpop.f32.mrf.mxu0 }
 0x105   :  { %v250_v46 = vpop.f32.mrf.mxu3 }
 0x106   :  { %v237_v47 = vpop.f32.mrf.mxu0 }
 0x107   :  { %v339_v4 = vpack.c.bf16 %v237_v47, %v235_v45  ;;  %v1050_v45 = vld [vmem:[%s1617_s4] sm:$0xff]  ;;  %s1203_s4 = smov 112  }
 0x108   :  { %541 = vmatpush.bf16.msrb.mxu1 %v1050_v45 }
 0x109   :  { %v352_v5 = vsel %vm347_vm12, %v339_v4, 0 }
 0x10d   :  { %v252_v48 = vpop.f32.mrf.mxu3 }
 0x10e   :  { %v240_v49 = vpop.f32.mrf.mxu0  ;;  %v1436_v50 = vpop.f32.mrf.mxu1  ;;  %v342_v60 = vpack.c.bf16 %v252_v48, %v250_v46 }
 0x110   :  { %v361_v61 = vsel %vm347_vm12, %v342_v60, 0 }
 0x115   :  { %v255_v51 = vpop.f32.mrf.mxu3 }
 0x116   :  { %v242_v52 = vpop.f32.mrf.mxu0  ;;  %v1438_v53 = vpop.f32.mrf.mxu1 }
 0x117   :  { %v338_v54 = vpack.c.bf16 %v1438_v53, %v1436_v50  ;;  %v340_v1 = vpack.c.bf16 %v242_v52, %v240_v49 }
 0x119   :  { %345 = vrot.lane.b32.xlu0 %v338_v54, %s1200_s2  ;;  %v355_v3 = vsel %vm347_vm12, %v340_v1, 0 }
 0x11d   :  { %v257_v55 = vpop.f32.mrf.mxu3 }
 0x11e   :  { %v343_v56 = vpack.c.bf16 %v257_v55, %v255_v51  ;;  %v245_v57 = vpop.f32.mrf.mxu0 }
 0x120   :  { %v364_v58 = vsel %vm347_vm12, %v343_v56, 0 }
 0x121   :  { %369 = vmatpush.bf16.xpose.msra.mxu2 %v364_v58  ;;  %424 = vrot.lane.b32.xlu0 %v343_v56, %s1200_s2 }
 0x126   :  { %v247_v62 = vpop.f32.mrf.mxu0 }
 0x127   :  { %v341_v63 = vpack.c.bf16 %v247_v62, %v245_v57 }
 0x129   :  { %370 = vmatpush.bf16.xpose.msra.mxu2 %v361_v61  ;;  %422 = vrot.lane.b32.xlu0 %v342_v60, %s1200_s2  ;;  %v358_v0 = vsel %vm347_vm12, %v341_v63, 0 }
 0x131   :  { %371 = vmatpush.bf16.xpose.msra.mxu2 %v358_v0 }
 0x139   :  { %372 = vmatpush.bf16.xpose.msra.mxu2 %v355_v3 }
 0x141   :  { %373 = vmatpush.bf16.xpose.msra.mxu2 %v352_v5 }
 0x18b   :  { %v346_v6 = vpop.permute.xlu0 %345 }
 0x18c   :  { %999 = vmatmul.msk.bf16.vlgmr.msra.gmra.mxu2 %vm347_vm12, %v346_v6 }
 0x193   :  { %v425_v7 = vpop.permute.xlu0 %424 }
 0x194   :  { %437 = vmatpush.bf16.msrb.mxu2 %v425_v7 }
 0x19b   :  { %v423_v8 = vpop.permute.xlu0 %422 }
 0x19c   :  { %438 = vmatpush.bf16.msrb.mxu2 %v423_v8 }
 0x20f   :  { %v375_v11 = vpop.f32.mrf.mxu2 }
 0x210   :  { %v384_v12 = vsel %vm382_vm13, %v375_v11, -1e+09 }
 0x211   :  { %v387_v13 = vsel %vm386_vm14, %v384_v12, -inf }
 0x212   :  { %388 = vmax.xlane.f32.xlu1 %v387_v13 }
 0x217   :  { %v377_v14 = vpop.f32.mrf.mxu2 }
 0x218   :  { %v385_v15 = vsel %vm383_vm15, %v377_v14, -1e+09  ;;  %vm820_vm15 = vcmask 122880  }
 0x219   :  { %v391_v16 = vsel %vm390_vm0, %v385_v15, -inf }
 0x21a   :  { %392 = vmax.xlane.f32.xlu2 %v391_v16 }
 0x22b   :  { %420 = vrot.lane.b32.xlu1 %v341_v63, %s1200_s2 }
 0x285   :  { %v389_v17 = vpop.xlane.xlu1 %388 }
 0x286   :  { %v394_v18 = vsub.f32 %v384_v12, %v389_v17 }
 0x288   :  { %v396_v19 = vmul.f32 1.442695, %v394_v18 }
 0x28a   :  { %1076 = vpow2.f32 %v396_v19 }
 0x28d   :  { %v393_v59 = vpop.xlane.xlu2 %392 }
 0x28e   :  { %v395_v20 = vsub.f32 %v385_v15, %v393_v59 }
 0x290   :  { %v1077_v21 = vpop.eup %1076  ;;  %v398_v22 = vmul.f32 1.442695, %v395_v20 }
 0x291   :  { %v400_v23 = vsel %vm386_vm14, %v1077_v21, 0.0 }
 0x292   :  { %1078 = vpow2.f32 %v398_v22  ;;  %401 = vadd.xlane.f32.xlu0 %v400_v23 }
 0x298   :  { %v1079_v2 = vpop.eup %1078 }
 0x299   :  { %v403_v24 = vsel %vm390_vm0, %v1079_v2, 0.0 }
 0x29a   :  { %404 = vadd.xlane.f32.xlu2 %v403_v24 }
 0x29d   :  { %v421_v25 = vpop.permute.xlu1 %420 }
 0x29e   :  { %439 = vmatpush.bf16.msrb.mxu2 %v421_v25 }
 0x2a6   :  { %416 = vrot.lane.b32.xlu0 %v339_v4, %s1200_s2 }
 0x2b2   :  { %418 = vrot.lane.b32.xlu2 %v340_v1, %s1200_s2 }
 0x305   :  { %v402_v28 = vpop.xlane.xlu0 %401 }
 0x30d   :  { %v405_v29 = vpop.xlane.xlu2 %404 }
 0x30e   :  { %1080 = vrcp.f32 %v405_v29 }
 0x30f   :  { %1082 = vrcp.f32 %v402_v28 }
 0x314   :  { %v1081_v30 = vpop.eup %1080 }
 0x315   :  { %v419_v31 = vpop.permute.xlu2 %418  ;;  %v1083_v32 = vpop.eup %1082  ;;  %v409_v33 = vmul.f32 %v1081_v30, %v1079_v2 }
 0x316   :  { %440 = vmatpush.bf16.msrb.mxu2 %v419_v31  ;;  %v408_v35 = vmul.f32 %v1083_v32, %v1077_v21 }
 0x318   :  { %v417_v34 = vpop.permute.xlu0 %416  ;;  %v410_v36 = vpack.c.bf16 %v409_v33, %v408_v35 }
 0x31a   :  { %441 = vmatpush.bf16.msrb.mxu2 %v417_v34 }
 0x31d   :  { %1000 = vmatmul.msk.bf16.vlgmr.msrb.gmra.mxu2 %vm386_vm14, %v410_v36 }
 0x3a0   :  { %v443_v37 = vpop.f32.mrf.mxu2 }
 0x3a8   :  { %v445_v38 = vpop.f32.mrf.mxu2 }
 0x3a9   :  { %v448_v39 = vpack.c.bf16 %v445_v38, %v443_v37 }
 0x3ab   :  { %1009 = vmatmul.msk.bf16.vlgmr.msrb.gmra.mxu3 %vm347_vm12, %v448_v39 }
 0x42e   :  { %v477_v40 = vpop.f32.mrf.mxu3 }
 0x42f   :  { %484 = vrot.lane.b32.xlu1 %v477_v40, %s1201_s3  ;;  %v548_v56 = vadd.f32 %v477_v40, %v1436_v50 }
 0x436   :  { %v479_v41 = vpop.f32.mrf.mxu3 }
 0x437   :  { %486 = vrot.lane.b32.xlu2 %v479_v41, %s1201_s3  ;;  %v549_v4 = vadd.f32 %v479_v41, %v1438_v53 }
 0x491   :  { %v487_v46 = vpop.permute.xlu2 %486 }
 0x492   :  { %v491_v47 = vadd.f32 %v487_v46, %v1438_v53 }
 0x494   :  { %v493_v51 = vmax.f32 %v491_v47, 0.0 }
 0x4a1   :  { %v485_v48 = vpop.permute.xlu1 %484 }
 0x4a2   :  { %v490_v49 = vadd.f32 %v485_v48, %v1436_v50 }
 0x4a4   :  { %v492_v52 = vmax.f32 %v490_v49, 0.0 }
 0x4a6   :  { %v494_v54 = vpack.c.bf16 %v493_v51, %v492_v52 }
 0x4a8   :  { %504 = vrot.lane.b32.xlu1 %v494_v54, %s1202_s23 }
 0x51a   :  { %v505_v55 = vpop.permute.xlu1 %504 }
 0x51b   :  { %1026 = vmatmul.msk.bf16.vlgmr.msrb.gmra.mxu1 %vm530_vm1, %v505_v55 }
 0x598   :  { %v543_v57 = vpop.f32.mrf.mxu1 }
 0x599   :  { %v1486_v58 = vadd.f32 %v548_v56, %v543_v57 }
 0x59b   :  { %v554_v60 = vrot.slane %v1486_v58, 4  ;;  %v1490_v61 = vrot.slane %v1486_v58, 1  ;;  %v571_v63 = vmin.f32 %v1486_v58, 20.0  ;;  %v1027_v0 = vrot.slane %v1486_v58, 10 }
 0x59c   :  { %vm569_vm7 = vcmp.gt.f32.partialorder %v1486_v58, 20.0 }
 0x59d   :  { %v560_v1 = vrot.slane %v554_v60, 6  ;;  %v572_v50 = vmin.f32 %v1490_v61, 20.0  ;;  %v573_v3 = vmul.f32 1.442695, %v571_v63  ;;  %vm570_vm6 = vcmp.gt.f32.partialorder %v1490_v61, 20.0 }
 0x59f   :  { %v1502_v5 = vsel %vm1492_vm5, %v1027_v0, %v560_v1  ;;  %v575_v6 = vmul.f32 1.442695, %v572_v50  ;;  %1084 = vpow2.f32 %v573_v3  ;;  %v562_v12 = vrot.slane %v560_v1, 4 }
 0x5a0   :  { %v545_v7 = vpop.f32.mrf.mxu1  ;;  %v609_v8 = vmin.f32 %v1502_v5, 20.0  ;;  %vm607_vm10 = vcmp.gt.f32.partialorder %v1502_v5, 20.0  ;;  %v646_v0 = vperm.slane %v1490_v61, 0  ;;  %v645_v3 = vperm.slane %v1486_v58, 0 }
 0x5a1   :  { %v551_v10 = vadd.f32 %v549_v4, %v545_v7  ;;  %1086 = vpow2.f32 %v575_v6 }
 0x5a2   :  { %v611_v11 = vmul.f32 1.442695, %v609_v8  ;;  %v651_v4 = vsub.f32 %v645_v3, %v1502_v5 }
 0x5a3   :  { %v563_v13 = vrot.slane %v551_v10, 6 }
 0x5a4   :  { %1088 = vpow2.f32 %v611_v11  ;;  %v653_v8 = vand.u32 2147483647, %v651_v4 }
 0x5a5   :  { %v1507_v14 = vsel %vm1492_vm5, %v562_v12, %v563_v13  ;;  %v1085_v53 = vpop.eup %1084 }
 0x5a6   :  { %v610_v15 = vmin.f32 %v1507_v14, 20.0  ;;  %v577_v17 = vadd.f32 1.0, %v1085_v53  ;;  %v580_v19 = vmul.f32 -0.5, %v1085_v53  ;;  %v583_v24 = vand.u32 2147483647, %v1085_v53 }
 0x5a7   :  { %v1087_v16 = vpop.eup %1086  ;;  %vm608_vm12 = vcmp.gt.f32.partialorder %v1507_v14, 20.0  ;;  %v652_v50 = vsub.f32 %v646_v0, %v1507_v14  ;;  %v655_v13 = vsub.f32 0.0, %v653_v8 }
 0x5a8   :  { %v613_v18 = vmul.f32 1.442695, %v610_v15  ;;  %v586_v59 = vadd.f32 1.0, %v1087_v16  ;;  %1090 = vlog2.f32 %v577_v17  ;;  %v589_v21 = vmul.f32 -0.5, %v1087_v16 }
 0x5a9   :  { %v581_v23 = vadd.f32 1.0, %v580_v19  ;;  %v592_v27 = vand.u32 2147483647, %v1087_v16  ;;  %vm584_vm2 = vcmp.lt.f32.partialorder %v583_v24, 0.0004427343 }
 0x5aa   :  { %v1089_v20 = vpop.eup %1088  ;;  %1092 = vpow2.f32 %v613_v18  ;;  %v590_v25 = vadd.f32 1.0, %v589_v21  ;;  %v654_v6 = vand.u32 2147483647, %v652_v50 }
 0x5ab   :  { %1094 = vlog2.f32 %v586_v59  ;;  %v615_v22 = vadd.f32 1.0, %v1089_v20  ;;  %v618_v2 = vmul.f32 -0.5, %v1089_v20  ;;  %v582_v30 = vmul.f32 %v1085_v53, %v581_v23 }
 0x5ac   :  { %v621_v33 = vand.u32 2147483647, %v1089_v20  ;;  %v591_v37 = vmul.f32 %v1087_v16, %v590_v25  ;;  %vm593_vm8 = vcmp.lt.f32.partialorder %v592_v27, 0.0004427343  ;;  %v656_v11 = vsub.f32 0.0, %v654_v6 }
 0x5ad   :  { %1096 = vlog2.f32 %v615_v22  ;;  %v619_v31 = vadd.f32 1.0, %v618_v2  ;;  %v657_v59 = vmul.f32 1.442695, %v655_v13 }
 0x5ae   :  { %v1091_v26 = vpop.eup %1090  ;;  %vm622_vm9 = vcmp.lt.f32.partialorder %v621_v33, 0.0004427343  ;;  %v659_v53 = vmul.f32 1.442695, %v656_v11 }
 0x5af   :  { %v579_v29 = vmul.f32 0.6931472, %v1091_v26  ;;  %v620_v43 = vmul.f32 %v1089_v20, %v619_v31 }
 0x5b0   :  { %v1093_v28 = vpop.eup %1092 }
 0x5b1   :  { %v1095_v32 = vpop.eup %1094  ;;  %v624_v34 = vadd.f32 1.0, %v1093_v28  ;;  %v585_v35 = vsel %vm584_vm2, %v582_v30, %v579_v29  ;;  %v627_v38 = vmul.f32 -0.5, %v1093_v28  ;;  %v630_v48 = vand.u32 2147483647, %v1093_v28 }
 0x5b2   :  { %v588_v36 = vmul.f32 0.6931472, %v1095_v32  ;;  %v595_v40 = vsel %vm569_vm7, %v1486_v58, %v585_v35 }
 0x5b3   :  { %v1097_v39 = vpop.eup %1096  ;;  %1098 = vlog2.f32 %v624_v34  ;;  %599 = vrot.lane.b32.xlu2 %v595_v40, %s1203_s4  ;;  %v628_v46 = vadd.f32 1.0, %v627_v38  ;;  %vm631_vm11 = vcmp.lt.f32.partialorder %v630_v48, 0.0004427343 }
 0x5b4   :  { %v594_v41 = vsel %vm593_vm8, %v591_v37, %v588_v36  ;;  %v617_v42 = vmul.f32 0.6931472, %v1097_v39 }
 0x5b5   :  { %v596_v44 = vsel %vm570_vm6, %v1490_v61, %v594_v41  ;;  %v629_v52 = vmul.f32 %v1093_v28, %v628_v46 }
 0x5b6   :  { %601 = vrot.lane.b32.xlu1 %v596_v44, %s1203_s4  ;;  %v623_v45 = vsel %vm622_vm9, %v620_v43, %v617_v42 }
 0x5b7   :  { %v633_v47 = vsel %vm607_vm10, %v1502_v5, %v623_v45  ;;  %vm775_vm10 = vcmask 125952  }
 0x5b8   :  { %637 = vrot.lane.b32.xlu0 %v633_v47, %s1203_s4 }
 0x5b9   :  { %v1099_v49 = vpop.eup %1098 }
 0x5ba   :  { %v626_v51 = vmul.f32 0.6931472, %v1099_v49 }
 0x5bc   :  { %v632_v54 = vsel %vm631_vm11, %v629_v52, %v626_v51  ;;  %vm835_vm11 = vcmask 1041409  }
 0x5bd   :  { %v634_v55 = vsel %vm608_vm12, %v1507_v14, %v632_v54  ;;  %vm838_vm12 = vcmask 25600  }
 0x5be   :  { %639 = vrot.lane.b32.xlu2 %v634_v55, %s1203_s4 }
 0x60d   :  { %v600_v56 = vpop.permute.xlu2 %599 }
 0x60e   :  { %v1519_v57 = vadd.f32 %v600_v56, %v1486_v58 }
 0x610   :  { %v782_v60 = vsub.f32 %v1519_v57, %v1486_v58  ;;  %v683_v23 = vsub.f32 0.0, %v1519_v57 }
 0x612   :  { %v1030_v62 = vadd.f32 -1.1544313, %v782_v60  ;;  %v1550_v33 = vperm.slane %v683_v23, 0 }
 0x614   :  { %v788_v63 = vmin.f32 %v1030_v62, 20.0  ;;  %vm786_vm14 = vcmp.gt.f32.partialorder %v1030_v62, 20.0 }
 0x616   :  { %v790_v1 = vmul.f32 1.442695, %v788_v63 }
 0x618   :  { %1100 = vpow2.f32 %v790_v1  ;;  %v640_v15 = vpop.permute.xlu2 %639 }
 0x619   :  { %v1532_v20 = vadd.f32 %v640_v15, %v1507_v14 }
 0x61b   :  { %v686_v29 = vsub.f32 0.0, %v1532_v20 }
 0x61e   :  { %v1101_v7 = vpop.eup %1100 }
 0x61f   :  { %v794_v10 = vadd.f32 1.0, %v1101_v7  ;;  %v797_v12 = vmul.f32 -0.5, %v1101_v7  ;;  %v800_v17 = vand.u32 2147483647, %v1101_v7 }
 0x621   :  { %1102 = vlog2.f32 %v794_v10  ;;  %v798_v16 = vadd.f32 1.0, %v797_v12  ;;  %vm801_vm13 = vcmp.lt.f32.partialorder %v800_v17, 0.0004427343 }
 0x622   :  { %1104 = vpow2.f32 %v659_v53 }
 0x623   :  { %v799_v24 = vmul.f32 %v1101_v7, %v798_v16  ;;  %1106 = vpow2.f32 %v657_v59 }
 0x627   :  { %v1103_v18 = vpop.eup %1102 }
 0x628   :  { %v602_v19 = vpop.permute.xlu1 %601  ;;  %v796_v22 = vmul.f32 0.6931472, %v1103_v18  ;;  %v1552_v35 = vpop.eup %1104 }
 0x629   :  { %v1535_v21 = vadd.f32 %v602_v19, %v1490_v61  ;;  %v1107_v42 = vpop.eup %1106  ;;  %v670_v44 = vadd.f32 1.0, %v1552_v35  ;;  %v676_v17 = vand.u32 2147483647, %v1552_v35  ;;  %v649_v19 = vmax.f32 %v645_v3, %v1502_v5 }
 0x62a   :  { %v638_v2 = vpop.permute.xlu0 %637  ;;  %v802_v28 = vsel %vm801_vm13, %v799_v24, %v796_v22  ;;  %v661_v48 = vadd.f32 1.0, %v1107_v42  ;;  %v664_v1 = vmul.f32 -0.5, %v1107_v42  ;;  %v667_v7 = vand.u32 2147483647, %v1107_v42 }
 0x62b   :  { %v684_v25 = vsub.f32 0.0, %v1535_v21  ;;  %v783_v26 = vsub.f32 %v1535_v21, %v1490_v61  ;;  %v1542_v27 = vadd.f32 %v638_v2, %v1502_v5  ;;  %v812_v34 = vsel %vm786_vm14, %v1030_v62, %v802_v28 }
 0x62c   :  { %v814_v39 = vadd.f32 1e-23, %v812_v34  ;;  %v673_v62 = vmul.f32 -0.5, %v1552_v35  ;;  %v665_v53 = vadd.f32 1.0, %v664_v1  ;;  %vm1568_vm0 = vcmp.lt.f32.partialorder %v667_v7, 0.0004427343 }
 0x62d   :  { %v1545_v30 = vperm.slane %v684_v25, 0  ;;  %v1547_v31 = vadd.f32 -1.1544313, %v783_v26  ;;  %v685_v32 = vsub.f32 0.0, %v1542_v27  ;;  %vm1574_vm4 = vcmp.lt.f32.partialorder %v676_v17, 0.0004427343 }
 0x62e   :  { %1108 = vlog2.f32 %v814_v39  ;;  %v674_v13 = vadd.f32 1.0, %v673_v62  ;;  %v666_v34 = vmul.f32 %v1107_v42, %v665_v53  ;;  %vm876_vm13 = vcmask 1024  }
 0x62f   :  { %v696_v36 = vsub.f32 %v1545_v30, %v686_v29  ;;  %v789_v37 = vmin.f32 %v1547_v31, 20.0  ;;  %v695_v38 = vsub.f32 %v1550_v33, %v685_v32  ;;  %vm787_vm3 = vcmp.gt.f32.partialorder %v1547_v31, 20.0 }
 0x630   :  { %v675_v26 = vmul.f32 %v1552_v35, %v674_v13  ;;  %v650_v35 = vmax.f32 %v646_v0, %v1507_v14  ;;  %v693_v61 = vmax.f32 %v1550_v33, %v685_v32  ;;  %vm889_vm14 = vcmask 0  }
 0x631   :  { %v698_v40 = vand.u32 2147483647, %v696_v36  ;;  %v792_v41 = vmul.f32 1.442695, %v789_v37  ;;  %v697_v43 = vand.u32 2147483647, %v695_v38 }
 0x633   :  { %v700_v45 = vsub.f32 0.0, %v698_v40  ;;  %1110 = vpow2.f32 %v792_v41  ;;  %v699_v46 = vsub.f32 0.0, %v697_v43 }
 0x634   :  { %1112 = vlog2.f32 %v670_v44  ;;  %v1109_v51 = vpop.eup %1108  ;;  %v730_v44 = vperm.slane %v1535_v21, 0  ;;  %v729_v21 = vperm.slane %v1519_v57, 0 }
 0x635   :  { %v703_v47 = vmul.f32 1.442695, %v700_v45  ;;  %v701_v49 = vmul.f32 1.442695, %v699_v46  ;;  %v817_v54 = vmul.f32 0.6931472, %v1109_v51  ;;  %v694_v46 = vmax.f32 %v1545_v30, %v686_v29 }
 0x636   :  { %v734_v29 = vmin.f32 %v730_v44, %v1532_v20 }
 0x637   :  { %1114 = vpow2.f32 %v703_v47  ;;  %v821_v56 = vsel %vm820_vm15, %v817_v54, 0.0 }
 0x638   :  { %1116 = vpow2.f32 %v701_v49  ;;  %822 = vadd.xlane.f32.xlu1 %v821_v56 }
 0x639   :  { %v1111_v52 = vpop.eup %1110  ;;  %1118 = vlog2.f32 %v661_v48 }
 0x63a   :  { %v803_v55 = vadd.f32 1.0, %v1111_v52  ;;  %v806_v60 = vmul.f32 -0.5, %v1111_v52  ;;  %v1113_v63 = vpop.eup %1112  ;;  %v809_v16 = vand.u32 2147483647, %v1111_v52 }
 0x63b   :  { %v672_v23 = vmul.f32 0.6931472, %v1113_v63 }
 0x63c   :  { %1120 = vlog2.f32 %v803_v55  ;;  %v807_v12 = vadd.f32 1.0, %v806_v60  ;;  %vm810_vm1 = vcmp.lt.f32.partialorder %v809_v16, 0.0004427343  ;;  %v733_v55 = vmin.f32 %v729_v21, %v1542_v27 }
 0x63d   :  { %v1115_v50 = vpop.eup %1114  ;;  %v678_v40 = vsel %vm1574_vm4, %v675_v26, %v672_v23 }
 0x63e   :  { %v1117_v4 = vpop.eup %1116  ;;  %v714_v6 = vadd.f32 1.0, %v1115_v50  ;;  %v717_v10 = vmul.f32 -0.5, %v1115_v50  ;;  %v808_v25 = vmul.f32 %v1111_v52, %v807_v12  ;;  %v720_v28 = vand.u32 2147483647, %v1115_v50 }
 0x63f   :  { %v1119_v8 = vpop.eup %1118  ;;  %v705_v11 = vadd.f32 1.0, %v1117_v4  ;;  %v708_v15 = vmul.f32 -0.5, %v1117_v4  ;;  %v711_v37 = vand.u32 2147483647, %v1117_v4  ;;  %v680_v49 = vadd.f32 %v678_v40, %v650_v35 }
 0x640   :  { %1122 = vlog2.f32 %v714_v6  ;;  %v663_v59 = vmul.f32 0.6931472, %v1119_v8  ;;  %v718_v2 = vadd.f32 1.0, %v717_v10  ;;  %vm721_vm5 = vcmp.lt.f32.partialorder %v720_v28, 0.0004427343 }
 0x641   :  { %1124 = vlog2.f32 %v705_v11  ;;  %v709_v36 = vadd.f32 1.0, %v708_v15  ;;  %vm712_vm7 = vcmp.lt.f32.partialorder %v711_v37, 0.0004427343  ;;  %v682_v60 = vmax.f32 %v680_v49, %v650_v35 }
 0x642   :  { %v1121_v18 = vpop.eup %1120  ;;  %v669_v38 = vsel %vm1568_vm0, %v666_v34, %v663_v59  ;;  %v719_v43 = vmul.f32 %v1115_v50, %v718_v2 }
 0x643   :  { %v805_v24 = vmul.f32 0.6931472, %v1121_v18  ;;  %v679_v51 = vadd.f32 %v669_v38, %v649_v19 }
 0x645   :  { %v811_v58 = vsel %vm810_vm1, %v808_v25, %v805_v24  ;;  %v681_v63 = vmax.f32 %v679_v51, %v649_v19 }
 0x646   :  { %v1123_v3 = vpop.eup %1122  ;;  %v813_v39 = vsel %vm787_vm3, %v1547_v31, %v811_v58  ;;  %v710_v31 = vmul.f32 %v1117_v4, %v709_v36 }
 0x647   :  { %v1125_v41 = vpop.eup %1124  ;;  %v716_v42 = vmul.f32 0.6931472, %v1123_v3  ;;  %v815_v45 = vadd.f32 1e-23, %v813_v39 }
 0x648   :  { %v707_v47 = vmul.f32 0.6931472, %v1125_v41 }
 0x649   :  { %v722_v48 = vsel %vm721_vm5, %v719_v43, %v716_v42  ;;  %1126 = vlog2.f32 %v815_v45 }
 0x64a   :  { %v724_v14 = vadd.f32 %v722_v48, %v694_v46  ;;  %v713_v0 = vsel %vm712_vm7, %v710_v31, %v707_v47 }
 0x64b   :  { %v723_v52 = vadd.f32 %v713_v0, %v693_v61 }
 0x64c   :  { %v726_v54 = vmul.f32 -1.0, %v724_v14 }
 0x64d   :  { %v725_v30 = vmul.f32 -1.0, %v723_v52 }
 0x64e   :  { %v736_v56 = vmin.f32 %v726_v54, %v734_v29 }
 0x64f   :  { %v1127_v62 = vpop.eup %1126  ;;  %v735_v32 = vmin.f32 %v725_v30, %v733_v55 }
 0x650   :  { %v819_v33 = vmul.f32 0.6931472, %v1127_v62  ;;  %v738_v1 = vsub.f32 %v736_v56, %v682_v60 }
 0x651   :  { %v737_v50 = vsub.f32 %v735_v32, %v681_v63 }
 0x652   :  { %v824_v4 = vsel %vm820_vm15, %v819_v33, 0.0  ;;  %v1029_v6 = vadd.f32 -1.1544313, %v738_v1 }
 0x653   :  { %v1028_v7 = vadd.f32 -1.1544313, %v737_v50  ;;  %825 = vadd.xlane.f32.xlu0 %v824_v4 }
 0x654   :  { %v744_v57 = vmin.f32 %v1029_v6, 20.0  ;;  %vm742_vm8 = vcmp.gt.f32.partialorder %v1029_v6, 20.0 }
 0x655   :  { %v743_v8 = vmin.f32 %v1028_v7, 20.0  ;;  %vm741_vm9 = vcmp.gt.f32.partialorder %v1028_v7, 20.0 }
 0x656   :  { %v747_v10 = vmul.f32 1.442695, %v744_v57 }
 0x657   :  { %v745_v20 = vmul.f32 1.442695, %v743_v8 }
 0x658   :  { %1128 = vpow2.f32 %v747_v10 }
 0x659   :  { %1130 = vpow2.f32 %v745_v20 }
 0x65e   :  { %v1129_v27 = vpop.eup %1128 }
 0x65f   :  { %v1131_v11 = vpop.eup %1130  ;;  %v758_v12 = vadd.f32 1.0, %v1129_v27  ;;  %v761_v13 = vmul.f32 -0.5, %v1129_v27  ;;  %v764_v17 = vand.u32 2147483647, %v1129_v27 }
 0x660   :  { %v749_v53 = vadd.f32 1.0, %v1131_v11  ;;  %v752_v15 = vmul.f32 -0.5, %v1131_v11  ;;  %v755_v19 = vand.u32 2147483647, %v1131_v11 }
 0x661   :  { %1132 = vlog2.f32 %v758_v12  ;;  %v762_v16 = vadd.f32 1.0, %v761_v13  ;;  %vm765_vm2 = vcmp.lt.f32.partialorder %v764_v17, 0.0004427343 }
 0x662   :  { %1134 = vlog2.f32 %v749_v53  ;;  %v753_v18 = vadd.f32 1.0, %v752_v15  ;;  %vm756_vm6 = vcmp.lt.f32.partialorder %v755_v19, 0.0004427343 }
 0x663   :  { %v763_v2 = vmul.f32 %v1129_v27, %v762_v16 }
 0x664   :  { %v754_v25 = vmul.f32 %v1131_v11, %v753_v18 }
 0x667   :  { %v1133_v59 = vpop.eup %1132 }
 0x668   :  { %v1135_v22 = vpop.eup %1134  ;;  %v760_v23 = vmul.f32 0.6931472, %v1133_v59 }
 0x669   :  { %v751_v24 = vmul.f32 0.6931472, %v1135_v22 }
 0x66a   :  { %v766_v26 = vsel %vm765_vm2, %v763_v2, %v760_v23 }
 0x66b   :  { %v768_v28 = vsel %vm742_vm8, %v1029_v6, %v766_v26  ;;  %v757_v34 = vsel %vm756_vm6, %v754_v25, %v751_v24 }
 0x66c   :  { %v770_v36 = vadd.f32 1e-23, %v768_v28  ;;  %v767_v37 = vsel %vm741_vm9, %v1028_v7, %v757_v34 }
 0x66d   :  { %v769_v58 = vadd.f32 1e-23, %v767_v37 }
 0x66e   :  { %1136 = vlog2.f32 %v770_v36 }
 0x66f   :  { %1138 = vlog2.f32 %v769_v58 }
 0x674   :  { %v1137_v5 = vpop.eup %1136 }
 0x675   :  { %v1139_v3 = vpop.eup %1138  ;;  %v774_v38 = vmul.f32 0.6931472, %v1137_v5 }
 0x676   :  { %v772_v39 = vmul.f32 0.6931472, %v1139_v3 }
 0x677   :  { %v779_v35 = vsel %vm775_vm10, %v774_v38, 0.0 }
 0x678   :  { %780 = vadd.xlane.f32.xlu1 %v779_v35  ;;  %v776_v40 = vsel %vm775_vm10, %v772_v39, 0.0 }
 0x679   :  { %777 = vadd.xlane.f32.xlu2 %v776_v40 }
 0x6ab   :  { %v823_v41 = vpop.xlane.xlu1 %822 }
 0x6ac   :  { %v827_v44 = vperm.slane %v823_v41, 0 }
 0x6c6   :  { %v826_v42 = vpop.xlane.xlu0 %825 }
 0x6c7   :  { %v828_v43 = vperm.slane %v826_v42, 0 }
 0x6eb   :  { %v781_v45 = vpop.xlane.xlu1 %780 }
 0x6ec   :  { %v830_v46 = vsub.f32 %v781_v45, %v828_v43  ;;  %v778_v47 = vpop.xlane.xlu2 %777 }
 0x6ed   :  { %v829_v31 = vsub.f32 %v778_v47, %v827_v44 }
 0x6ee   :  { %v834_v48 = vperm.slane %v830_v46, %v1382_v9  ;;  %v872_v6 = vrot.slane %v830_v46, 7 }
 0x6ef   :  { %v833_v61 = vperm.slane %v829_v31, %v1382_v9 }
 0x6f0   :  { %v873_v8 = vsel %vm835_vm11, %v872_v6, %v829_v31 }
 0x6f1   :  { %v836_v14 = vsel %vm835_vm11, %v834_v48, %v833_v61 }
 0x6f2   :  { %v840_v0 = vsel %vm838_vm12, %v836_v14, -inf  ;;  %839 = vst.msk [vmem:[#allocation2] sm:$0x3] %vm838_vm12, %v836_v14 }
 0x6f3   :  { %841 = vmax.xlane.f32.xlu0 %v840_v0  ;;  %901 = dma.vmem_to_hbm [thread:$0]  %s897_s28, 32, %s899_s26, [#allocation3]  }
 0x766   :  { %v842_v49 = vpop.xlane.xlu0 %841 }
 0x767   :  { %v844_v51 = vperm.slane %v842_v49, 0  ;;  %v845_v21 = vperm.slane %v842_v49, 1 }
 0x769   :  { %v848_v52 = vsub.f32 %v829_v31, %v844_v51  ;;  %v849_v54 = vsub.f32 %v830_v46, %v845_v21 }
 0x76b   :  { %v850_v29 = vmul.f32 1.442695, %v848_v52  ;;  %v852_v30 = vmul.f32 1.442695, %v849_v54 }
 0x76d   :  { %1140 = vpow2.f32 %v850_v29 }
 0x76e   :  { %1142 = vpow2.f32 %v852_v30 }
 0x773   :  { %v1141_v55 = vpop.eup %1140 }
 0x774   :  { %v1143_v56 = vpop.eup %1142  ;;  %857 = vperm.xlu2 %1074, %v1141_v55  }
 0x775   :  { %860 = vperm.xlu1 %1073, %v1143_v56  }
 0x7ce   :  { %v858_v60 = vpop.permute.xlu2 %857 }
 0x7cf   :  { %v862_v63 = vperm.slane %v858_v60, %v1382_v9 }
 0x7e7   :  { %v861_v62 = vpop.permute.xlu1 %860 }
 0x7e8   :  { %v863_v32 = vperm.slane %v861_v62, %v1382_v9 }
 0x7ea   :  { %v864_v33 = vsel %vm835_vm11, %v863_v32, %v862_v63 }
 0x7eb   :  { %v866_v1 = vsel %vm838_vm12, %v864_v33, 0.0 }
 0x7ec   :  { %867 = vadd.xlane.f32.xlu0 %v866_v1 }
 0x85f   :  { %v868_v50 = vpop.xlane.xlu0 %867 }
 0x860   :  { %1144 = vlog2.f32 %v868_v50 }
 0x866   :  { %v1145_v4 = vpop.eup %1144 }
 0x867   :  { %v870_v7 = vmul.f32 0.6931472, %v1145_v4 }
 0x869   :  { %v871_v57 = vadd.f32 %v870_v7, %v842_v49 }
 0x86b   :  { %v875_v10 = vsub.f32 %v871_v57, %v873_v8 }
 0x86d   :  { %v877_v20 = vsel %vm876_vm13, %v875_v10, 0.0 }
 0x86e   :  { %878 = vadd.xlane.f32.xlu0 %v877_v20 }
 0x8e1   :  { %v879_v9 = vpop.xlane.xlu0 %878 }
 0x8e2   :  { %v880_v27 = vrot.slane %v879_v9, 4 }
 0x8e4   :  { %v881_v11 = vadd.f32 %v880_v27, %v879_v9 }
 0x8e6   :  { %v882_v12 = vrot.slane %v881_v11, 2 }
 0x8e8   :  { %v883_v13 = vadd.f32 %v882_v12, %v881_v11 }
 0x8ea   :  { %v884_v53 = vrot.slane %v883_v13, 1 }
 0x8ec   :  { %v885_v15 = vadd.f32 %v884_v53, %v883_v13 }
 0x8ee   :  { %1062 = vpush %v885_v15 }
 0x91f   :  { %s1063_s5 = spop %1062 }
 0x920   :  { %v887_v16 = vstv %s1063_s5 }
 0x921   :  { %v888_v17 = vmul.f32 0.5, %v887_v16 }
 0x923   :  { %890 = vst.msk [vmem:[#allocation4] sm:$0x1] %vm889_vm14, %v888_v17 }
 0x924   :  { %912 = dma.vmem_to_hbm [thread:$0]  %s908_s30, 16, %s910_s0, [#allocation5]  }
 0x925   :  { %1194 = dma.done.wait [#allocation3], 32  }
 0x926   :  { %1195 = vsyncadd [#allocation3], 4294967264 }
 0x927   :  { %1196 = dma.done.wait [#allocation5], 16  }
 0x928   :  { %1197 = vsyncadd [#allocation5], 4294967280 }
 0x929   :  { %921 = vsyncpa [#allocation3], 1 }
 0x92a   :  { %922 = vsyncpa [#allocation5], 1 }

</bundles_post_ra>
